<compile_context>
chip_gen: v7x
topology: tpu7x:2x2x1
jax: 0.10.0
libtpu: 0.0.40
codegen_flags: <defaults>
</compile_context>

<pallas_src>
import functools

import jax
import jax.numpy as jnp
from jax.experimental import pallas as pl
from jax.experimental.pallas import tpu as pltpu


# ----------------------------------------------------------------------------
# Fused kernel: conv(all branches, packed) + max-pool  -> VMEM feature scratch
#               last grid step: BatchNorm -> FC -> ReLU -> FC -> softmax
# ----------------------------------------------------------------------------
def _cnn_sent_kernel(emb_ref, w_ref, mask_ref, bias_ref, gamma_ref, beta_ref,
                     fc_w_ref, fc_b_ref, out_w_ref, out_b_ref,
                     out_ref, feat_ref, *, B_tile, L, D, H_max, C_pad, eps):
    i = pl.program_id(0)

    # ---- conv branches (channel-packed) + max-pool over the sequence ----
    x = emb_ref[...].reshape(B_tile * L, D)                 # (B_tile*L, D) f32
    acc = jnp.zeros((B_tile * L, C_pad), jnp.float32)
    for j in range(H_max):                                  # small static loop
        # row t of xj is x[t + j]; wrapped tail rows are garbage but only land
        # on positions that the pool mask discards (or on zero-padded weights).
        xj = x if j == 0 else jnp.roll(x, -j, axis=0)
        acc = acc + jnp.dot(xj, w_ref[j], preferred_element_type=jnp.float32)
    conv = acc.reshape(B_tile, L, C_pad) + mask_ref[...][None]   # -1e30 on tail
    feat = jnp.max(conv, axis=1) + bias_ref[...]            # bias AFTER the pool
    feat_ref[i] = feat                                      # stays in VMEM

    # ---- head epilogue: needs full-batch BatchNorm statistics ----
    @pl.when(i == pl.num_programs(0) - 1)
    def _head():
        f = feat_ref[...].reshape(-1, C_pad)                # (B, C_pad)
        # BatchNorm1d training-mode semantics (batch statistics), matching the
        # freshly-constructed PyTorch module; use running stats for inference.
        mean = jnp.mean(f, axis=0, keepdims=True)
        var = jnp.mean((f - mean) ** 2, axis=0, keepdims=True)
        xn = (f - mean) * jax.lax.rsqrt(var + eps)
        xn = xn * gamma_ref[...] + beta_ref[...]
        h = jnp.dot(xn, fc_w_ref[...], preferred_element_type=jnp.float32)
        h = jnp.maximum(h + fc_b_ref[...], 0.0)
        # TODO(synk): nn.Dropout() train-mode stochastic mask omitted (eval identity).
        logits = jnp.dot(h, out_w_ref[...], preferred_element_type=jnp.float32)
        logits = logits + out_b_ref[...]
        m = jnp.max(logits, axis=1, keepdims=True)
        e = jnp.exp(logits - m)
        denom = jnp.sum(e, axis=1, keepdims=True)
        # approx=True would move the divide to the EUP slot; exact kept for the
        # tight numerical check below.
        out_ref[...] = e * pl.reciprocal(denom, approx=False)


# ----------------------------------------------------------------------------
# Host-side packing of the branch weights into one lane-dense slab
# ----------------------------------------------------------------------------
def _pack_params(params, L):
    convs = params["convs"]
    heights = [w.shape[0] for (w, _) in convs]
    ocs = [w.shape[2] for (w, _) in convs]
    D = convs[0][0].shape[1]
    H_max = max(heights)
    C = sum(ocs)
    C_pad = ((C + 127) // 128) * 128                        # lane-dense channel axis

    w_packed = jnp.zeros((H_max, D, C_pad), jnp.float32)
    b_packed = jnp.zeros((1, C_pad), jnp.float32)
    mask = jnp.zeros((L, C_pad), jnp.float32)               # 0 = keep, -1e30 = drop
    col = 0
    for (w, b), H, oc in zip(convs, heights, ocs):
        w_packed = w_packed.at[:H, :, col:col + oc].set(w)
        b_packed = b_packed.at[:, col:col + oc].set(b)
        mask = mask.at[L - H + 1:, col:col + oc].set(-1e30)  # positions >= Lout
        col += oc
    gamma = jnp.ones((1, C_pad), jnp.float32).at[:, :C].set(params["bn_gamma"])
    beta = jnp.zeros((1, C_pad), jnp.float32).at[:, :C].set(params["bn_beta"])
    fc_w = jnp.zeros((C_pad, params["fc_w"].shape[1]),
                     jnp.float32).at[:C, :].set(params["fc_w"])
    return w_packed, b_packed, mask, gamma, beta, fc_w, H_max, C_pad


# ----------------------------------------------------------------------------
# Full forward (embedding lookup is XLA glue; everything else in one kernel)
# ----------------------------------------------------------------------------
def cnn_sent_forward(batch_line, params, *, batch_tile=None, eps=1e-5):
    emb_tbl = params["embedding"]
    B, L = batch_line.shape
    D = emb_tbl.shape[1]

    # Embedding gather stays in XLA; the fused kernel reads the result once.
    # TODO(synk): stream the gather in-kernel (scalar-prefetched ids + DMA) for
    # large B*L to remove the HBM write+read of the (B, L, D) activations.
    emb = emb_tbl[batch_line]                               # (B, L, D) f32

    (w_packed, b_packed, mask, gamma, beta, fc_w,
     H_max, C_pad) = _pack_params(params, L)
    fc_b = params["fc_b"]
    out_w = params["out_w"]
    out_b = params["out_b"]
    fc_dim = fc_w.shape[1]
    n_cls = out_w.shape[1]

    # Batch tile: largest divisor of B not exceeding the request.  For
    # production shapes, size this against the per-generation VMEM budget
    # (roughly half the v5e/v6e tile on v7x's 64 MiB VMEM).
    if batch_tile is None:
        batch_tile = min(B, 8)
    batch_tile = max(1, min(batch_tile, B))
    while B % batch_tile:
        batch_tile -= 1
    n_tiles = B // batch_tile

    kernel = functools.partial(_cnn_sent_kernel, B_tile=batch_tile, L=L, D=D,
                               H_max=H_max, C_pad=C_pad, eps=eps)

    grid_spec = pltpu.PrefetchScalarGridSpec(
        num_scalar_prefetch=0,
        grid=(n_tiles,),
        in_specs=[
            pl.BlockSpec((batch_tile, L, D), lambda i: (i, 0, 0)),   # emb tile
            pl.BlockSpec((H_max, D, C_pad), lambda i: (0, 0, 0)),    # packed conv W
            pl.BlockSpec((L, C_pad), lambda i: (0, 0)),              # pool mask
            pl.BlockSpec((1, C_pad), lambda i: (0, 0)),              # conv bias
            pl.BlockSpec((1, C_pad), lambda i: (0, 0)),              # bn gamma
            pl.BlockSpec((1, C_pad), lambda i: (0, 0)),              # bn beta
            pl.BlockSpec((C_pad, fc_dim), lambda i: (0, 0)),         # fc W
            pl.BlockSpec((1, fc_dim), lambda i: (0, 0)),             # fc b
            pl.BlockSpec((fc_dim, n_cls), lambda i: (0, 0)),         # out W
            pl.BlockSpec((1, n_cls), lambda i: (0, 0)),              # out b
        ],
        out_specs=pl.BlockSpec((B, n_cls), lambda i: (0, 0)),        # resident
        scratch_shapes=[pltpu.VMEM((n_tiles, batch_tile, C_pad), jnp.float32)],
    )

    return pl.pallas_call(
        kernel,
        out_shape=jax.ShapeDtypeStruct((B, n_cls), jnp.float32),
        grid_spec=grid_spec,
        compiler_params=pltpu.CompilerParams(
            # "arbitrary": feature scratch accumulates across batch tiles and the
            # BN epilogue at the last step needs all of them (full-batch stats).
            dimension_semantics=("arbitrary",)),
    )(emb, w_packed, mask, b_packed, gamma, beta, fc_w, fc_b, out_w, out_b)


# ----------------------------------------------------------------------------
# Deterministic parameter init (synthetic weights, shapes from __init__)
# ----------------------------------------------------------------------------
def init_params(key, num_words, emb_dim, conv_heights, out_channels, fc_dim=20,
                n_cls=2):
    keys = jax.random.split(key, 4 + 2 * len(conv_heights))
    emb = 0.1 * jax.random.normal(keys[0], (num_words, emb_dim), jnp.float32)
    emb = emb.at[0].set(0.0)                                # padding_idx=0 row
    convs = []
    for i, (h, oc) in enumerate(zip(conv_heights, out_channels)):
        w = 0.1 * jax.random.normal(keys[1 + 2 * i], (h, emb_dim, oc),
                                    jnp.float32)            # (oc,1,h,D) -> (h,D,oc)
        b = 0.1 * jax.random.normal(keys[2 + 2 * i], (1, oc), jnp.float32)
        convs.append((w, b))
    c_total = sum(out_channels)
    fc_w = 0.1 * jax.random.normal(keys[-3], (c_total, fc_dim), jnp.float32)
    fc_b = 0.1 * jax.random.normal(keys[-2], (1, fc_dim), jnp.float32)
    out_w = 0.1 * jax.random.normal(keys[-1], (fc_dim, n_cls), jnp.float32)
    out_b = jnp.zeros((1, n_cls), jnp.float32)
    return {
        "embedding": emb,
        "convs": convs,
        "bn_gamma": jnp.ones((1, c_total), jnp.float32),
        "bn_beta": jnp.zeros((1, c_total), jnp.float32),
        "fc_w": fc_w, "fc_b": fc_b,
        "out_w": out_w, "out_b": out_b,
    }


# ----------------------------------------------------------------------------
# Pure-JAX reference for correctness checking (PyTorch-shaped math)
# ----------------------------------------------------------------------------
def reference_forward(batch_line, params, eps=1e-5):
    emb = params["embedding"][batch_line]
    feats = []
    for (w, b) in params["convs"]:
        H = w.shape[0]
        L = emb.shape[1]
        Lout = L - H + 1
        acc = jnp.zeros((emb.shape[0], Lout, w.shape[2]), jnp.float32)
        for j in range(H):
            acc = acc + jnp.einsum("bld,do->blo", emb[:, j:j + Lout, :], w[j])
        acc = acc + b.reshape(1, 1, -1)
        feats.append(jnp.max(acc, axis=1))
    f = jnp.concatenate(feats, axis=1)
    mean = jnp.mean(f, axis=0, keepdims=True)
    var = jnp.mean((f - mean) ** 2, axis=0, keepdims=True)
    xn = (f - mean) / jnp.sqrt(var + eps)
    xn = xn * params["bn_gamma"] + params["bn_beta"]
    h = jnp.maximum(xn @ params["fc_w"] + params["fc_b"], 0.0)
    logits = h @ params["out_w"] + params["out_b"]
    return jax.nn.softmax(logits, axis=1)


if __name__ == "__main__":
    # small shapes consistent with the module
    num_words, max_line_len, emb_dim = 100, 16, 32
    conv_heights, out_channels = [3, 4, 5], [8, 8, 8]
    B = 4

    key = jax.random.PRNGKey(0)
    k_params, k_tokens = jax.random.split(key)
    params = init_params(k_params, num_words, emb_dim, conv_heights,
                         out_channels)
    batch_line = jax.random.randint(k_tokens, (B, max_line_len), 0, num_words,
                                    dtype=jnp.int32)

    # batch_tile=2 -> grid of 2 batch tiles, exercising the scratch + epilogue.
    out = cnn_sent_forward(batch_line, params, batch_tile=2)
    out = jax.block_until_ready(out)

    ref = reference_forward(batch_line, params)
    assert out.shape == (B, 2)
    assert jnp.allclose(jnp.sum(out, axis=1), 1.0, atol=1e-5)
    assert jnp.allclose(out, ref, atol=1e-4, rtol=1e-4), (out, ref)

    print("KERNEL_OK")
</pallas_src>

<mosaic_0001>
module attributes {stable_mosaic.version = 11 : i64} {
  func.func @_cnn_sent_kernel(%arg0: i32, %arg1: memref<2x16x32xf32, #tpu.memory_space<vmem>>, %arg2: memref<5x32x128xf32, #tpu.memory_space<vmem>>, %arg3: memref<16x128xf32, #tpu.memory_space<vmem>>, %arg4: memref<1x128xf32, #tpu.memory_space<vmem>>, %arg5: memref<1x128xf32, #tpu.memory_space<vmem>>, %arg6: memref<1x128xf32, #tpu.memory_space<vmem>>, %arg7: memref<128x20xf32, #tpu.memory_space<vmem>>, %arg8: memref<1x20xf32, #tpu.memory_space<vmem>>, %arg9: memref<20x2xf32, #tpu.memory_space<vmem>>, %arg10: memref<1x2xf32, #tpu.memory_space<vmem>>, %arg11: memref<4x2xf32, #tpu.memory_space<vmem>>, %arg12: memref<2x2x128xf32, #tpu.memory_space<vmem>>) attributes {dimension_semantics = [#tpu.dimension_semantics<arbitrary>], iteration_bounds = array<i64: 2>, scalar_prefetch = 0 : i64, scratch_operands = 1 : i64, tpu.core_type = #tpu.core_type<tc>, window_params = [{transform_indices = @transform_0, window_bounds = array<i64: 2, 16, 32>}, {pipeline_mode = #tpu.pipeline_mode<synchronous>, transform_indices = @transform_1, window_bounds = array<i64: 5, 32, 128>}, {pipeline_mode = #tpu.pipeline_mode<synchronous>, transform_indices = @transform_2, window_bounds = array<i64: 16, 128>}, {pipeline_mode = #tpu.pipeline_mode<synchronous>, transform_indices = @transform_3, window_bounds = array<i64: 1, 128>}, {pipeline_mode = #tpu.pipeline_mode<synchronous>, transform_indices = @transform_4, window_bounds = array<i64: 1, 128>}, {pipeline_mode = #tpu.pipeline_mode<synchronous>, transform_indices = @transform_5, window_bounds = array<i64: 1, 128>}, {pipeline_mode = #tpu.pipeline_mode<synchronous>, transform_indices = @transform_6, window_bounds = array<i64: 128, 20>}, {pipeline_mode = #tpu.pipeline_mode<synchronous>, transform_indices = @transform_7, window_bounds = array<i64: 1, 20>}, {pipeline_mode = #tpu.pipeline_mode<synchronous>, transform_indices = @transform_8, window_bounds = array<i64: 20, 2>}, {pipeline_mode = #tpu.pipeline_mode<synchronous>, transform_indices = @transform_9, window_bounds = array<i64: 1, 2>}, {pipeline_mode = #tpu.pipeline_mode<synchronous>, transform_indices = @transform_10, window_bounds = array<i64: 4, 2>}]} {
    %c0 = arith.constant 0 : index
    %c0_0 = arith.constant 0 : index
    %c0_1 = arith.constant 0 : index
    %0 = vector.load %arg1[%c0, %c0_0, %c0_1] : memref<2x16x32xf32, #tpu.memory_space<vmem>>, vector<2x16x32xf32>
    %1 = vector.shape_cast %0 : vector<2x16x32xf32> to vector<32x32xf32>
    %cst = arith.constant 0.000000e+00 : f32
    %2 = vector.broadcast %cst : f32 to vector<32x128xf32>
    %c0_2 = arith.constant 0 : index
    %c0_3 = arith.constant 0 : index
    %c0_4 = arith.constant 0 : index
    %3 = vector.load %arg2[%c0_2, %c0_3, %c0_4] : memref<5x32x128xf32, #tpu.memory_space<vmem>>, vector<1x32x128xf32>
    %4 = vector.shape_cast %3 : vector<1x32x128xf32> to vector<32x128xf32>
    %cst_5 = arith.constant dense<0.000000e+00> : vector<32x128xf32>
    %5 = tpu.matmul %1, %4, %cst_5 {dimension_numbers = #tpu.dot_dimension_numbers<[1], [0], [0], [1], [0, 0, 1, 1], [], []>} : vector<32x32xf32>, vector<32x128xf32>, vector<32x128xf32> -> vector<32x128xf32>
    %6 = arith.addf %2, %5 : vector<32x128xf32>
    %7 = vector.extract_strided_slice %1 {offsets = [1, 0], sizes = [31, 32], strides = [1, 1]} : vector<32x32xf32> to vector<31x32xf32>
    %8 = vector.extract_strided_slice %1 {offsets = [0, 0], sizes = [1, 32], strides = [1, 1]} : vector<32x32xf32> to vector<1x32xf32>
    %9 = tpu.concatenate %7, %8 in 0 : vector<31x32xf32>, vector<1x32xf32> -> vector<32x32xf32>
    %c1 = arith.constant 1 : index
    %c0_6 = arith.constant 0 : index
    %c0_7 = arith.constant 0 : index
    %10 = vector.load %arg2[%c1, %c0_6, %c0_7] : memref<5x32x128xf32, #tpu.memory_space<vmem>>, vector<1x32x128xf32>
    %11 = vector.shape_cast %10 : vector<1x32x128xf32> to vector<32x128xf32>
    %cst_8 = arith.constant dense<0.000000e+00> : vector<32x128xf32>
    %12 = tpu.matmul %9, %11, %cst_8 {dimension_numbers = #tpu.dot_dimension_numbers<[1], [0], [0], [1], [0, 0, 1, 1], [], []>} : vector<32x32xf32>, vector<32x128xf32>, vector<32x128xf32> -> vector<32x128xf32>
    %13 = arith.addf %6, %12 : vector<32x128xf32>
    %14 = vector.extract_strided_slice %1 {offsets = [2, 0], sizes = [30, 32], strides = [1, 1]} : vector<32x32xf32> to vector<30x32xf32>
    %15 = vector.extract_strided_slice %1 {offsets = [0, 0], sizes = [2, 32], strides = [1, 1]} : vector<32x32xf32> to vector<2x32xf32>
    %16 = tpu.concatenate %14, %15 in 0 : vector<30x32xf32>, vector<2x32xf32> -> vector<32x32xf32>
    %c2 = arith.constant 2 : index
    %c0_9 = arith.constant 0 : index
    %c0_10 = arith.constant 0 : index
    %17 = vector.load %arg2[%c2, %c0_9, %c0_10] : memref<5x32x128xf32, #tpu.memory_space<vmem>>, vector<1x32x128xf32>
    %18 = vector.shape_cast %17 : vector<1x32x128xf32> to vector<32x128xf32>
    %cst_11 = arith.constant dense<0.000000e+00> : vector<32x128xf32>
    %19 = tpu.matmul %16, %18, %cst_11 {dimension_numbers = #tpu.dot_dimension_numbers<[1], [0], [0], [1], [0, 0, 1, 1], [], []>} : vector<32x32xf32>, vector<32x128xf32>, vector<32x128xf32> -> vector<32x128xf32>
    %20 = arith.addf %13, %19 : vector<32x128xf32>
    %21 = vector.extract_strided_slice %1 {offsets = [3, 0], sizes = [29, 32], strides = [1, 1]} : vector<32x32xf32> to vector<29x32xf32>
    %22 = vector.extract_strided_slice %1 {offsets = [0, 0], sizes = [3, 32], strides = [1, 1]} : vector<32x32xf32> to vector<3x32xf32>
    %23 = tpu.concatenate %21, %22 in 0 : vector<29x32xf32>, vector<3x32xf32> -> vector<32x32xf32>
    %c3 = arith.constant 3 : index
    %c0_12 = arith.constant 0 : index
    %c0_13 = arith.constant 0 : index
    %24 = vector.load %arg2[%c3, %c0_12, %c0_13] : memref<5x32x128xf32, #tpu.memory_space<vmem>>, vector<1x32x128xf32>
    %25 = vector.shape_cast %24 : vector<1x32x128xf32> to vector<32x128xf32>
    %cst_14 = arith.constant dense<0.000000e+00> : vector<32x128xf32>
    %26 = tpu.matmul %23, %25, %cst_14 {dimension_numbers = #tpu.dot_dimension_numbers<[1], [0], [0], [1], [0, 0, 1, 1], [], []>} : vector<32x32xf32>, vector<32x128xf32>, vector<32x128xf32> -> vector<32x128xf32>
    %27 = arith.addf %20, %26 : vector<32x128xf32>
    %28 = vector.extract_strided_slice %1 {offsets = [4, 0], sizes = [28, 32], strides = [1, 1]} : vector<32x32xf32> to vector<28x32xf32>
    %29 = vector.extract_strided_slice %1 {offsets = [0, 0], sizes = [4, 32], strides = [1, 1]} : vector<32x32xf32> to vector<4x32xf32>
    %30 = tpu.concatenate %28, %29 in 0 : vector<28x32xf32>, vector<4x32xf32> -> vector<32x32xf32>
    %c4 = arith.constant 4 : index
    %c0_15 = arith.constant 0 : index
    %c0_16 = arith.constant 0 : index
    %31 = vector.load %arg2[%c4, %c0_15, %c0_16] : memref<5x32x128xf32, #tpu.memory_space<vmem>>, vector<1x32x128xf32>
    %32 = vector.shape_cast %31 : vector<1x32x128xf32> to vector<32x128xf32>
    %cst_17 = arith.constant dense<0.000000e+00> : vector<32x128xf32>
    %33 = tpu.matmul %30, %32, %cst_17 {dimension_numbers = #tpu.dot_dimension_numbers<[1], [0], [0], [1], [0, 0, 1, 1], [], []>} : vector<32x32xf32>, vector<32x128xf32>, vector<32x128xf32> -> vector<32x128xf32>
    %34 = arith.addf %27, %33 : vector<32x128xf32>
    %35 = vector.shape_cast %34 : vector<32x128xf32> to vector<2x16x128xf32>
    %c0_18 = arith.constant 0 : index
    %c0_19 = arith.constant 0 : index
    %36 = vector.load %arg3[%c0_18, %c0_19] : memref<16x128xf32, #tpu.memory_space<vmem>>, vector<16x128xf32>
    %37 = vector.shape_cast %36 : vector<16x128xf32> to vector<1x16x128xf32>
    %38 = vector.broadcast %37 : vector<1x16x128xf32> to vector<2x16x128xf32>
    %39 = arith.addf %35, %38 : vector<2x16x128xf32>
    %cst_20 = arith.constant dense<0xFF800000> : vector<2x128xf32>
    %40 = vector.multi_reduction <maximumf>, %39, %cst_20 [1] : vector<2x16x128xf32> to vector<2x128xf32>
    %c0_21 = arith.constant 0 : index
    %c0_22 = arith.constant 0 : index
    %41 = vector.load %arg4[%c0_21, %c0_22] : memref<1x128xf32, #tpu.memory_space<vmem>>, vector<1x128xf32>
    %42 = vector.broadcast %41 : vector<1x128xf32> to vector<2x128xf32>
    %43 = arith.addf %40, %42 : vector<2x128xf32>
    %44 = arith.index_cast %arg0 : i32 to index
    %c0_23 = arith.constant 0 : index
    %c0_24 = arith.constant 0 : index
    %45 = vector.load %arg12[%44, %c0_23, %c0_24] : memref<2x2x128xf32, #tpu.memory_space<vmem>>, vector<1x2x128xf32>
    %46 = vector.shape_cast %45 : vector<1x2x128xf32> to vector<2x128xf32>
    %47 = vector.shape_cast %43 : vector<2x128xf32> to vector<1x2x128xf32>
    tpu.vector_store %arg12[%44, %c0_23, %c0_24], %47 {strides = array<i32>} : memref<2x2x128xf32, #tpu.memory_space<vmem>>, vector<1x2x128xf32>,
    %c1_i32 = arith.constant 1 : i32
    %48 = arith.cmpi eq, %arg0, %c1_i32 : i32
    %49 = arith.extui %48 : i1 to i32
    %c0_i32 = arith.constant 0 : i32
    %50 = arith.cmpi ne, %49, %c0_i32 : i32
    scf.if %50 {
      %c0_25 = arith.constant 0 : index
      %c0_26 = arith.constant 0 : index
      %c0_27 = arith.constant 0 : index
      %51 = vector.load %arg12[%c0_25, %c0_26, %c0_27] : memref<2x2x128xf32, #tpu.memory_space<vmem>>, vector<2x2x128xf32>
      %52 = vector.shape_cast %51 : vector<2x2x128xf32> to vector<4x128xf32>
      %cst_28 = arith.constant dense<0.000000e+00> : vector<128xf32>
      %53 = vector.multi_reduction <add>, %52, %cst_28 [0] : vector<4x128xf32> to vector<128xf32>
      %54 = vector.shape_cast %53 : vector<128xf32> to vector<1x128xf32>
      %cst_29 = arith.constant 4.000000e+00 : f32
      %55 = vector.broadcast %cst_29 : f32 to vector<1x128xf32>
      %56 = arith.divf %54, %55 : vector<1x128xf32>
      %57 = vector.broadcast %56 : vector<1x128xf32> to vector<4x128xf32>
      %58 = arith.subf %52, %57 : vector<4x128xf32>
      %59 = arith.mulf %58, %58 : vector<4x128xf32>
      %cst_30 = arith.constant dense<0.000000e+00> : vector<128xf32>
      %60 = vector.multi_reduction <add>, %59, %cst_30 [0] : vector<4x128xf32> to vector<128xf32>
      %61 = vector.shape_cast %60 : vector<128xf32> to vector<1x128xf32>
      %cst_31 = arith.constant 4.000000e+00 : f32
      %62 = vector.broadcast %cst_31 : f32 to vector<1x128xf32>
      %63 = arith.divf %61, %62 : vector<1x128xf32>
      %64 = vector.broadcast %56 : vector<1x128xf32> to vector<4x128xf32>
      %65 = arith.subf %52, %64 : vector<4x128xf32>
      %cst_32 = arith.constant 9.99999974E-6 : f32
      %66 = vector.broadcast %cst_32 : f32 to vector<1x128xf32>
      %67 = arith.addf %63, %66 : vector<1x128xf32>
      %68 = math.rsqrt %67 : vector<1x128xf32>
      %69 = vector.broadcast %68 : vector<1x128xf32> to vector<4x128xf32>
      %70 = arith.mulf %65, %69 : vector<4x128xf32>
      %c0_33 = arith.constant 0 : index
      %c0_34 = arith.constant 0 : index
      %71 = vector.load %arg5[%c0_33, %c0_34] : memref<1x128xf32, #tpu.memory_space<vmem>>, vector<1x128xf32>
      %72 = vector.broadcast %71 : vector<1x128xf32> to vector<4x128xf32>
      %73 = arith.mulf %70, %72 : vector<4x128xf32>
      %c0_35 = arith.constant 0 : index
      %c0_36 = arith.constant 0 : index
      %74 = vector.load %arg6[%c0_35, %c0_36] : memref<1x128xf32, #tpu.memory_space<vmem>>, vector<1x128xf32>
      %75 = vector.broadcast %74 : vector<1x128xf32> to vector<4x128xf32>
      %76 = arith.addf %73, %75 : vector<4x128xf32>
      %c0_37 = arith.constant 0 : index
      %c0_38 = arith.constant 0 : index
      %77 = vector.load %arg7[%c0_37, %c0_38] : memref<128x20xf32, #tpu.memory_space<vmem>>, vector<128x20xf32>
      %cst_39 = arith.constant dense<0.000000e+00> : vector<4x20xf32>
      %78 = tpu.matmul %76, %77, %cst_39 {dimension_numbers = #tpu.dot_dimension_numbers<[1], [0], [0], [1], [0, 0, 1, 1], [], []>} : vector<4x128xf32>, vector<128x20xf32>, vector<4x20xf32> -> vector<4x20xf32>
      %c0_40 = arith.constant 0 : index
      %c0_41 = arith.constant 0 : index
      %79 = vector.load %arg8[%c0_40, %c0_41] : memref<1x20xf32, #tpu.memory_space<vmem>>, vector<1x20xf32>
      %80 = vector.broadcast %79 : vector<1x20xf32> to vector<4x20xf32>
      %81 = arith.addf %78, %80 : vector<4x20xf32>
      %cst_42 = arith.constant 0.000000e+00 : f32
      %82 = vector.broadcast %cst_42 : f32 to vector<4x20xf32>
      %83 = arith.maximumf %81, %82 : vector<4x20xf32>
      %c0_43 = arith.constant 0 : index
      %c0_44 = arith.constant 0 : index
      %84 = vector.load %arg9[%c0_43, %c0_44] : memref<20x2xf32, #tpu.memory_space<vmem>>, vector<20x2xf32>
      %cst_45 = arith.constant dense<0.000000e+00> : vector<4x2xf32>
      %85 = tpu.matmul %83, %84, %cst_45 {dimension_numbers = #tpu.dot_dimension_numbers<[1], [0], [0], [1], [0, 0, 1, 1], [], []>} : vector<4x20xf32>, vector<20x2xf32>, vector<4x2xf32> -> vector<4x2xf32>
      %c0_46 = arith.constant 0 : index
      %c0_47 = arith.constant 0 : index
      %86 = vector.load %arg10[%c0_46, %c0_47] : memref<1x2xf32, #tpu.memory_space<vmem>>, vector<1x2xf32>
      %87 = vector.broadcast %86 : vector<1x2xf32> to vector<4x2xf32>
      %88 = arith.addf %85, %87 : vector<4x2xf32>
      %cst_48 = arith.constant dense<0xFF800000> : vector<4xf32>
      %89 = vector.multi_reduction <maximumf>, %88, %cst_48 [1] : vector<4x2xf32> to vector<4xf32>
      %90 = vector.shape_cast %89 : vector<4xf32> to vector<4x1xf32>
      %91 = vector.broadcast %90 : vector<4x1xf32> to vector<4x2xf32>
      %92 = arith.subf %88, %91 : vector<4x2xf32>
      %93 = math.exp %92 : vector<4x2xf32>
      %cst_49 = arith.constant dense<0.000000e+00> : vector<4xf32>
      %94 = vector.multi_reduction <add>, %93, %cst_49 [1] : vector<4x2xf32> to vector<4xf32>
      %95 = vector.shape_cast %94 : vector<4xf32> to vector<4x1xf32>
      %96 = tpu.reciprocal %95 : vector<4x1xf32> -> vector<4x1xf32>
      %97 = vector.broadcast %96 : vector<4x1xf32> to vector<4x2xf32>
      %98 = arith.mulf %93, %97 : vector<4x2xf32>
      %c0_50 = arith.constant 0 : index
      %c0_51 = arith.constant 0 : index
      %99 = vector.load %arg11[%c0_50, %c0_51] : memref<4x2xf32, #tpu.memory_space<vmem>>, vector<4x2xf32>
      tpu.vector_store %arg11[%c0_50, %c0_51], %98 {strides = array<i32>} : memref<4x2xf32, #tpu.memory_space<vmem>>, vector<4x2xf32>,
    } else {
    }
    return
  }
  func.func @transform_0(%arg0: i32) -> (i32, i32, i32) {
    %c0_i32 = arith.constant 0 : i32
    %c0_i32_0 = arith.constant 0 : i32
    %c0_i32_1 = arith.constant 0 : i32
    return %arg0, %c0_i32, %c0_i32_0 : i32, i32, i32
  }
  func.func @transform_1(%arg0: i32) -> (i32, i32, i32) {
    %c0_i32 = arith.constant 0 : i32
    %c0_i32_0 = arith.constant 0 : i32
    %c0_i32_1 = arith.constant 0 : i32
    %c0_i32_2 = arith.constant 0 : i32
    return %c0_i32, %c0_i32_0, %c0_i32_1 : i32, i32, i32
  }
  func.func @transform_2(%arg0: i32) -> (i32, i32) {
    %c0_i32 = arith.constant 0 : i32
    %c0_i32_0 = arith.constant 0 : i32
    %c0_i32_1 = arith.constant 0 : i32
    return %c0_i32, %c0_i32_0 : i32, i32
  }
  func.func @transform_3(%arg0: i32) -> (i32, i32) {
    %c0_i32 = arith.constant 0 : i32
    %c0_i32_0 = arith.constant 0 : i32
    %c0_i32_1 = arith.constant 0 : i32
    return %c0_i32, %c0_i32_0 : i32, i32
  }
  func.func @transform_4(%arg0: i32) -> (i32, i32) {
    %c0_i32 = arith.constant 0 : i32
    %c0_i32_0 = arith.constant 0 : i32
    %c0_i32_1 = arith.constant 0 : i32
    return %c0_i32, %c0_i32_0 : i32, i32
  }
  func.func @transform_5(%arg0: i32) -> (i32, i32) {
    %c0_i32 = arith.constant 0 : i32
    %c0_i32_0 = arith.constant 0 : i32
    %c0_i32_1 = arith.constant 0 : i32
    return %c0_i32, %c0_i32_0 : i32, i32
  }
  func.func @transform_6(%arg0: i32) -> (i32, i32) {
    %c0_i32 = arith.constant 0 : i32
    %c0_i32_0 = arith.constant 0 : i32
    %c0_i32_1 = arith.constant 0 : i32
    return %c0_i32, %c0_i32_0 : i32, i32
  }
  func.func @transform_7(%arg0: i32) -> (i32, i32) {
    %c0_i32 = arith.constant 0 : i32
    %c0_i32_0 = arith.constant 0 : i32
    %c0_i32_1 = arith.constant 0 : i32
    return %c0_i32, %c0_i32_0 : i32, i32
  }
  func.func @transform_8(%arg0: i32) -> (i32, i32) {
    %c0_i32 = arith.constant 0 : i32
    %c0_i32_0 = arith.constant 0 : i32
    %c0_i32_1 = arith.constant 0 : i32
    return %c0_i32, %c0_i32_0 : i32, i32
  }
  func.func @transform_9(%arg0: i32) -> (i32, i32) {
    %c0_i32 = arith.constant 0 : i32
    %c0_i32_0 = arith.constant 0 : i32
    %c0_i32_1 = arith.constant 0 : i32
    return %c0_i32, %c0_i32_0 : i32, i32
  }
  func.func @transform_10(%arg0: i32) -> (i32, i32) {
    %c0_i32 = arith.constant 0 : i32
    %c0_i32_0 = arith.constant 0 : i32
    %c0_i32_1 = arith.constant 0 : i32
    return %c0_i32, %c0_i32_0 : i32, i32
  }
}

</mosaic_0001>

<bundles_post_ra>
// kernel: tpu_custom_call.1
= control target key start
LH: loop header
LB: loop body
LE: loop exit
PB: predicated region body
PF: predicated region fallthrough
CT: control target
= control target key end

     0   :  { %15 = vsyncpa [#allocation4], 0  ;;  %s2441_s0 = inlined_call_operand.hbm [shape: f32[4,16,32], index: 0, kind: input, shape index: {}]   ;;  %s2442_s1 = inlined_call_operand.vmem [shape: f32[5,32,128], index: 1, kind: input, shape index: {}]   ;;  %s2443_s2 = inlined_call_operand.vmem [shape: f32[16,128], index: 2, kind: input, shape index: {}]   ;;  %s2444_s3 = inlined_call_operand.hbm [shape: f32[1,128], index: 3, kind: input, shape index: {}]   ;;  %s2445_s4 = inlined_call_operand.hbm [shape: f32[1,128], index: 4, kind: input, shape index: {}]   ;;  %s2446_s5 = inlined_call_operand.hbm [shape: f32[1,128], index: 5, kind: input, shape index: {}]   ;;  %s2447_s6 = inlined_call_operand.vmem [shape: f32[128,20], index: 6, kind: input, shape index: {}]   ;;  %s2448_s7 = inlined_call_operand.vmem [shape: f32[1,20], index: 7, kind: input, shape index: {}]   ;;  %s2449_s8 = inlined_call_operand.vmem [shape: f32[20,2], index: 8, kind: input, shape index: {}]   ;;  %s2450_s9 = inlined_call_operand.vmem [shape: f32[1,2], index: 9, kind: input, shape index: {}]   ;;  %s2451_s10 = inlined_call_operand.vmem [shape: f32[4,2], index: 10, kind: output, shape index: {}]  }
   0x1   :  { %17 = vsyncpa [#allocation4 + $0x1], 0 }
   0x2   :  { %18 = vsyncpa [#allocation6], 0 }
   0x3   :  { %19 = vsyncpa [#allocation9], 0  ;;  %s2018_s13 = smov 0   ;;  %s2020_s14 = smov 0  }
   0x4   :  { %s2022_s15 = smov 0   ;;  %s2024_s16 = smov 0  }
   0x5 LB: > { %s2037_s17 = sadd.s32 4294967295, %s1951_s16   ;;  %p45_p0 = scmp.ne.s32.totalorder %s1943_s14, %s1939_s13  ;;  %s1951_s16 = sphi %s2024_s16, %s2469_s16   ;;  %s1947_s15 = sphi %s2022_s15, %s2468_s15   ;;  %s1943_s14 = sphi %s2020_s14, %s2467_s14   ;;  %s1939_s13 = sphi %s2018_s13, %s2466_s13  }
   0x6   : > { %p2452_p1 = scmp.eq.s32.totalorder %s2037_s17, 0  ;;  %p1388_p2 = scmp.ge.s32.totalorder %s1951_s16, 1 }
   0x7   : > { %p266_p3 = scmp.lt.s32.totalorder %s1951_s16, 3  ;;  %s1953_s20 = smov [#allocation5]  }
   0x8   : > { %p2045_p4 = por %p2452_p1, %p45_p0  ;;  %s285_s21 = sshll.u32 %s1953_s20, 4  ;;  %s286_s21 = int_to_ptr.vmem [resolvable:$true] %s285_s21 }
   0x9   : > { %p2049_p5 = pnand %p1388_p2, %p266_p3  ;;  %s1954_s22 = smov [#allocation7]  }
   0xa   : > { %s2455_s18 = scalar_select %p2045_p4, 1, 0 }
   0xb   : > { %s2456_s19 = scalar_select %p2049_p5, 1, 0 }
   0xc   : > { %p1727_p6 = pneg %p2049_p5  ;;  %s296_s23 = sshll.u32 %s1954_s22, 4  ;;  %s2061_s23 = int_to_ptr.vmem [resolvable:$true] %s296_s23 }
   0xd   : > { %s1955_s25 = smov [#allocation8]   ;;  %s1795_s29 = scalar_lea.hbm %s2444_s3, 16 }
   0xe   : > { %p2057_p7 = pnand %p1727_p6, %p2452_p1  ;;  %s307_s26 = sshll.u32 %s1955_s25, 4  ;;  %s2063_s26 = int_to_ptr.vmem [resolvable:$true] %s307_s26 }
   0xf   : > { %p1796_p8 = scmp.ne.s32.totalorder %s2444_s3, %s1795_s29  ;;  %p1802_p12 = scmp.lt.u32.totalorder %s1795_s29, %s2444_s3 }
  0x10   : > { %p2073_p9 = pneg %p2057_p7 }
  0x12   : > { %p1798_p10 = pnand %p2073_p9, %p1796_p8 }
  0x14   : > { %p1799_p11 = pneg %p1798_p10 }
  0x16   : > { %p1804_p13 = pnand %p1802_p12, %p1799_p11 }
  0x18   : > { %1807 = shalt.err (!%p1804_p13)
}
  0x19   : > { %s1808_s22 = scalar_lea.vmem %s286_s21, 16  ;;  %s1815_s25 = scalar_lea.vmem %s286_s21, 32 }
  0x1a   : > { %p1809_p0 = scmp.ne.s32.totalorder %s286_s21, %s1808_s22  ;;  %p1816_p6 = scmp.lt.s32.totalorder %s286_s21, %s286_s21 }
  0x1b   : > { %p1817_p1 = scmp.lt.s32.totalorder %s1815_s25, %s1808_s22 }
  0x1c   : > { %p1811_p2 = pnand %p1809_p0, %p2073_p9 }
  0x1d   : > { %p1818_p4 = por %p1817_p1, %p1816_p6 }
  0x1e   : > { %p1812_p3 = pneg %p1811_p2 }
  0x20   : > { %p1819_p5 = pnand %p1818_p4, %p1812_p3 }
  0x22   : > { %1822 = shalt.err (!%p1819_p5)
}
  0x23   : > { %1730 = dma.hbm_to_vmem [thread:$0]  (!%p2057_p7), %s2444_s3, 16, %s286_s21, [#allocation6]  }
  0x24   : > { %s1823_s11 = scalar_lea.hbm %s2445_s4, 16 }
  0x25   : > { %p1824_p8 = scmp.ne.s32.totalorder %s2445_s4, %s1823_s11  ;;  %p1830_p4 = scmp.lt.u32.totalorder %s1823_s11, %s2445_s4 }
  0x27   : > { %p1826_p10 = pnand %p1824_p8, %p2073_p9 }
  0x29   : > { %p1827_p1 = pneg %p1826_p10 }
  0x2b   : > { %p1832_p5 = pnand %p1830_p4, %p1827_p1 }
  0x2d   : > { %1835 = shalt.err (!%p1832_p5)
}
  0x2e   : > { %s1836_s21 = scalar_lea.vmem %s2061_s23, 16  ;;  %s1843_s27 = scalar_lea.vmem %s2061_s23, 32 }
  0x2f   : > { %p1837_p11 = scmp.ne.s32.totalorder %s2061_s23, %s1836_s21  ;;  %p1844_p0 = scmp.lt.s32.totalorder %s2061_s23, %s2061_s23 }
  0x30   : > { %p1845_p2 = scmp.lt.s32.totalorder %s1843_s27, %s1836_s21 }
  0x31   : > { %p1839_p12 = pnand %p1837_p11, %p2073_p9 }
  0x32   : > { %p1846_p3 = por %p1845_p2, %p1844_p0 }
  0x33   : > { %p1840_p13 = pneg %p1839_p12 }
  0x35   : > { %p1847_p6 = pnand %p1846_p3, %p1840_p13 }
  0x37   : > { %1850 = shalt.err (!%p1847_p6)
}
  0x38   : > { %1733 = dma.hbm_to_vmem [thread:$0]  (!%p2057_p7), %s2445_s4, 16, %s2061_s23, [#allocation6]  }
  0x39   : > { %s1851_s13 = scalar_lea.hbm %s2446_s5, 16 }
  0x3a   : > { %p1852_p8 = scmp.ne.s32.totalorder %s2446_s5, %s1851_s13  ;;  %p1858_p4 = scmp.lt.u32.totalorder %s1851_s13, %s2446_s5 }
  0x3c   : > { %p1854_p10 = pnand %p1852_p8, %p2073_p9 }
  0x3e   : > { %p1855_p1 = pneg %p1854_p10 }
  0x40   : > { %p1860_p5 = pnand %p1858_p4, %p1855_p1 }
  0x42   : > { %1863 = shalt.err (!%p1860_p5)
}
  0x43   : > { %s1864_s23 = scalar_lea.vmem %s2063_s26, 16  ;;  %s1871_s27 = scalar_lea.vmem %s2063_s26, 32 }
  0x44   : > { %p1865_p11 = scmp.ne.s32.totalorder %s2063_s26, %s1864_s23  ;;  %p1872_p0 = scmp.lt.s32.totalorder %s2063_s26, %s2063_s26 }
  0x45   : > { %p1873_p2 = scmp.lt.s32.totalorder %s1871_s27, %s1864_s23 }
  0x46   : > { %p1867_p12 = pnand %p1865_p11, %p2073_p9 }
  0x47   : > { %p1874_p3 = por %p1873_p2, %p1872_p0 }
  0x48   : > { %p1868_p13 = pneg %p1867_p12 }
  0x4a   : > { %p1875_p6 = pnand %p1874_p3, %p1868_p13 }
  0x4c   : > { %1878 = shalt.err (!%p1875_p6)
}
  0x4d   : > { %1736 = dma.hbm_to_vmem [thread:$0]  (!%p2057_p7), %s2446_s5, 16, %s2063_s26, [#allocation9]  }
  0x4e   : > { %s2138_s12 = sadd.s32 1, %s1951_s16   ;;  %s32_s24 = sadd.s32 1, %s1947_s15 }
  0x4f   : > { %s29_s30 = ssub.s32 %s1951_s16, %s2138_s12  ;;  %p39_p8 = scmp.ne.s32.totalorder %s1947_s15, %s1943_s14 }
  0x50   : > { %p30_p9 = scmp.eq.s32.totalorder %s29_s30, 0  ;;  %p40_p10 = scmp.eq.s32.totalorder %s1951_s16, 0 }
  0x51   : > { %p1744_p1 = scmp.lt.s32.totalorder %s1951_s16, 2  ;;  %s330_s13 = sand.u32 1, %s1947_s15  }
  0x52   : > { %s2148_s11 = scalar_select %p30_p9, %s1947_s15, %s32_s24  }
  0x53   : > { %p41_p4 = por %p40_p10, %p39_p8  ;;  %s1393_s20 = sshll.u32 %s330_s13, 5 }
  0x54   : > { %s1450_s22 = sshll.u32 %s1951_s16, 9  ;;  %s334_s26 = scalar_lea.vmem [#allocation3], %s1393_s20 }
  0x55   : > { %s2155_s23 = scalar_lea.hbm %s2441_s0, %s1450_s22  ;;  %s342_s27 = sshll.u32 %s334_s26, 4  ;;  %s2157_s27 = int_to_ptr.vmem [resolvable:$true] %s342_s27 }
  0x56   : > { %p2159_p7 = pnand %p1744_p1, %p41_p4  ;;  %s2163_s16 = scalar_lea.sflag [#allocation4], %s330_s13 }
  0x57   : > { %s1879_s29 = scalar_lea.hbm %s2155_s23, 512  ;;  %s1884_s20 = scalar_lea.hbm %s2441_s0, 1024 }
  0x58   : > { %p1880_p5 = scmp.ne.s32.totalorder %s2155_s23, %s1879_s29  ;;  %p1881_p11 = pneg %p2159_p7 }
  0x59   : > { %p1885_p0 = scmp.lt.u32.totalorder %s2155_s23, %s2441_s0  ;;  %p1886_p2 = scmp.lt.u32.totalorder %s1884_s20, %s1879_s29 }
  0x5a   : > { %p1882_p12 = pnand %p1881_p11, %p1880_p5  ;;  %p1888_p6 = scmp.lt.u32.totalorder %s1879_s29, %s2155_s23 }
  0x5b   : > { %p1887_p3 = por %p1886_p2, %p1885_p0 }
  0x5c   : > { %p1883_p13 = pneg %p1882_p12 }
  0x5d   : > { %p1889_p9 = por %p1888_p6, %p1887_p3 }
  0x5f   : > { %p1890_p8 = pnand %p1889_p9, %p1883_p13 }
  0x61   : > { %1893 = shalt.err (!%p1890_p8)
}
  0x62   : > { %s1894_s13 = scalar_lea.vmem %s2157_s27, 512  ;;  %s1956_s21 = smov [#allocation3]  }
  0x63   : > { %p1895_p10 = scmp.ne.s32.totalorder %s2157_s27, %s1894_s13  ;;  %s1899_s26 = sshll.u32 %s1956_s21, 4  ;;  %s1900_s26 = int_to_ptr.vmem [resolvable:$false] %s1899_s26 }
  0x64   : > { %s1901_s30 = scalar_lea.vmem %s1900_s26, 1024  ;;  %p1902_p5 = scmp.lt.s32.totalorder %s2157_s27, %s1900_s26 }
  0x65   : > { %p1897_p1 = pnand %p1895_p10, %p1881_p11  ;;  %p1903_p12 = scmp.lt.s32.totalorder %s1901_s30, %s1894_s13 }
  0x67   : > { %p1898_p4 = pneg %p1897_p1  ;;  %p1904_p0 = por %p1903_p12, %p1902_p5 }
  0x69   : > { %p1905_p2 = pnand %p1904_p0, %p1898_p4 }
  0x6b   : > { %1908 = shalt.err (!%p1905_p2)
}
  0x6c   : > { %s1957_s29 = smov 128   ;;  %s1958_s24 = smov 8  }
  0x6d   : > { %1740 = dma.hbm_to_vmem [thread:$0]  (!%p2159_p7), %s2155_s23, 512, %s2157_s27, %s2163_s16, %s1957_s29, %s1957_s29, %s1958_s24  }
  0x6e   : > { %p2460_p11 = scmp.ne.s32.totalorder %s2456_s19, 0 }
  0x6f   : > { %s356_s20 = sand.u32 (!%p2460_p11), 1, %s1943_s14   ;;  %p2461_p13 = scmp.ne.s32.totalorder (!%p2460_p11), %s2455_s18, 0 }
  0x70   : > { %354 = sbr.rel (%p2460_p11) target bundleno = 1215 (0x4bf), region = 60  ;;  %s1398_s22 = sshll.u32 (!%p2460_p11), %s356_s20, 5 }
  0x71   : > { %s357_s25 = scalar_lea.sflag (!%p2460_p11), [#allocation4], %s356_s20  ;;  %s2194_s13 = scalar_lea.vmem (!%p2460_p11), [#allocation3], %s1398_s22 }
  0x77   : > { %1926 = dma.done.wait (%p2461_p13), %s357_s25, 512  }
  0x78   : > { %1928 = vsyncadd (%p2461_p13), %s357_s25, 4294966784  ;;  %p2462_p3 = scmp.eq.s32.totalorder %s2037_s17, 0 }
  0x7a   : > { %1930 = dma.done.wait (%p2462_p3), [#allocation6], 32   ;;  %p2463_p7 = pmov %p2462_p3 }
  0x7b   : > { %p2464_p6 = pmov %p2462_p3 }
  0x7c   : > { %1932 = vsyncadd (%p2463_p7), [#allocation6], 4294967264 }
  0x7d   : > { %1934 = dma.done.wait (%p2464_p6), [#allocation9], 16   ;;  %p2465_p9 = pmov %p2462_p3 }
  0x7e   : > { %v1402_v0 = vld [vmem:[%s2442_s1 + $0x20] sm:$0xff]  ;;  %v1403_v1 = vld [vmem:[%s2442_s1 + $0x28] sm:$0xff]  ;;  %v1404_v5 = vld [vmem:[%s2442_s1 + $0x30] sm:$0xff]  ;;  %vm417_vm0 = vcmask 1046528   ;;  %vm621_vm1 = vcmask 1045504   ;;  %vm433_vm2 = vcmask 261120  }
  0x7f   : > { %1936 = vsyncadd (%p2465_p9), [#allocation9], 4294967280  ;;  %v1414_v2 = vld [vmem:[%s2442_s1 + $0x40] sm:$0xff]  ;;  %v1626_v3 = vpack.c.bf16 %v1403_v1, %v1402_v0  ;;  %v1415_v4 = vld [vmem:[%s2442_s1 + $0x48] sm:$0xff]  ;;  %vm735_vm3 = vcmask 1044480   ;;  %vm849_vm4 = vcmask 1043456  }
  0x80   : > { %v1405_v6 = vld [vmem:[%s2442_s1 + $0x38] sm:$0xff]  ;;  %v1642_v7 = vpack.c.bf16 %v1415_v4, %v1414_v2  ;;  %v1416_v9 = vld [vmem:[%s2442_s1 + $0x50] sm:$0xff]  ;;  %v2233_v11 = vld [vmem:[%s2194_s13] sm:$0xff]  ;;  %s1439_s19 = sshll.u32 %s2037_s17, 1  ;;  %vm995_vm5 = vcmask 1041409   ;;  %p1440_p8 = scmp.ne.s32.totalorder %s2037_s17, 1 }
  0x81   : > { %v1630_v8 = vpack.c.bf16 %v1405_v6, %v1404_v5  ;;  %v1417_v10 = vld [vmem:[%s2442_s1 + $0x58] sm:$0xff]  ;;  %1627 = vmatprep.subr.bf16.mxu1 %v1626_v3  ;;  %v2236_v13 = vld [vmem:[%s2194_s13 + $0x8] sm:$0xff]  ;;  %v418_v14 = vrot.slane %v2233_v11, 1  ;;  %v622_v15 = vrot.slane %v2233_v11, 2  ;;  %v409_v17 = vld [vmem:[%s2442_s1] sm:$0xff]  ;;  %v736_v42 = vrot.slane %v2233_v11, 3 }
  0x82   : > { %v1646_v12 = vpack.c.bf16 %v1417_v10, %v1416_v9  ;;  %v2241_v16 = vld [vmem:[%s2194_s13 + $0x10] sm:$0xff]  ;;  %1643 = vmatprep.subr.bf16.mxu0 %v1642_v7  ;;  %1629 = vmatpush3.bf16.msra.mxu1 %v1626_v3  ;;  %v419_v18 = vrot.slane %v2236_v13, 1  ;;  %v623_v19 = vrot.slane %v2236_v13, 2  ;;  %v410_v21 = vld [vmem:[%s2442_s1 + $0x8] sm:$0xff]  ;;  %v1422_v22 = vld [vmem:[%s2442_s1 + $0x60] sm:$0xff]  ;;  %v737_v43 = vrot.slane %v2236_v13, 3 }
  0x83   : > { %v421_v20 = vrot.slane %v2241_v16, 1  ;;  %1645 = vmatpush3.bf16.msra.mxu0 %v1642_v7  ;;  %1631 = vmatprep.subr.bf16.mxu1 %v1630_v8  ;;  %v1634_v23 = vpack.c.bf16 %v410_v21, %v409_v17  ;;  %v625_v24 = vrot.slane %v2241_v16, 2  ;;  %v1423_v25 = vld [vmem:[%s2442_s1 + $0x68] sm:$0xff]  ;;  %v2260_v26 = vld [vmem:[%s2194_s13 + $0x18] sm:$0xff]  ;;  %v411_v32 = vld [vmem:[%s2442_s1 + $0x10] sm:$0xff]  ;;  %v739_v48 = vrot.slane %v2241_v16, 3 }
  0x84   : > { %1647 = vmatprep.subr.bf16.mxu0 %v1646_v12  ;;  %v420_v27 = vsel %vm417_vm0, %v418_v14, %v419_v18  ;;  %v624_v28 = vsel %vm621_vm1, %v622_v15, %v623_v19  ;;  %v1650_v29 = vpack.c.bf16 %v1423_v25, %v1422_v22  ;;  %v423_v30 = vrot.slane %v2260_v26, 1  ;;  %v412_v33 = vld [vmem:[%s2442_s1 + $0x18] sm:$0xff]  ;;  %v1424_v35 = vld [vmem:[%s2442_s1 + $0x70] sm:$0xff]  ;;  %v1430_v44 = vld [vmem:[%s2442_s1 + $0x80] sm:$0xff]  ;;  %s999_s23 = scalar_lea.vmem [#allocation2], %s1439_s19 }
  0x85   : > { %1520 = vmatprep.mubr.msk.f32.mxu1 %vm433_vm2, %v420_v27  ;;  %1548 = vmatprep.mubr.msk.f32.mxu0 %vm433_vm2, %v624_v28  ;;  %v627_v31 = vrot.slane %v2260_v26, 2  ;;  %v422_v34 = vsel %vm417_vm0, %v419_v18, %v421_v20  ;;  %v1425_v36 = vld [vmem:[%s2442_s1 + $0x78] sm:$0xff]  ;;  %v626_v37 = vsel %vm621_vm1, %v623_v19, %v625_v24  ;;  %v1638_v39 = vpack.c.bf16 %v412_v33, %v411_v32  ;;  %v1431_v45 = vld [vmem:[%s2442_s1 + $0x88] sm:$0xff]  ;;  %v1432_v52 = vld [vmem:[%s2442_s1 + $0x90] sm:$0xff] }
  0x86   : > { %1633 = vmatpush3.bf16.msra.mxu1 %v1630_v8  ;;  %v424_v38 = vsel %vm417_vm0, %v421_v20, %v423_v30  ;;  %v1654_v41 = vpack.c.bf16 %v1425_v36, %v1424_v35  ;;  %v427_v46 = vsel %vm417_vm0, %v423_v30, %v418_v14  ;;  %v1658_v49 = vpack.c.bf16 %v1431_v45, %v1430_v44  ;;  %v1433_v53 = vld [vmem:[%s2442_s1 + $0x98] sm:$0xff]  ;;  %v964_v10 = vld [vmem:[%s2443_s2 + $0x8] sm:$0xff]  ;;  %v963_v14 = vld [vmem:[%s2443_s2] sm:$0xff] }
  0x87   : > { %1649 = vmatpush3.bf16.msra.mxu0 %v1646_v12  ;;  %1635 = vmatprep.subr.bf16.mxu1 %v1634_v23  ;;  %v628_v40 = vsel %vm621_vm1, %v625_v24, %v627_v31  ;;  %v631_v47 = vsel %vm621_vm1, %v627_v31, %v622_v15  ;;  %v738_v50 = vsel %vm735_vm3, %v736_v42, %v737_v43  ;;  %v741_v51 = vrot.slane %v2260_v26, 3  ;;  %v1438_v36 = vld [vmem:[#allocation5] ss:$0 sm:$0xff]  ;;  %v1113_v44 = vld [vmem:[%s2447_s6 + $0x8] sm:$0xff] (!%p1440_p8)  ;;  %v1114_v45 = vld [vmem:[%s2447_s6 + $0x10] sm:$0xff] (!%p1440_p8) }
  0x88   : > { %1651 = vmatprep.subr.bf16.mxu0 %v1650_v29  ;;  %v740_v54 = vsel %vm735_vm3, %v737_v43, %v739_v48  ;;  %v1662_v55 = vpack.c.bf16 %v1433_v53, %v1432_v52  ;;  %v850_v56 = vrot.slane %v2233_v11, 4  ;;  %v851_v57 = vrot.slane %v2236_v13, 4  ;;  %v1112_v43 = vld [vmem:[%s2447_s6] sm:$0xff] (!%p1440_p8) }
  0x89   : > { %1521 = vmatmul.mubr.msk.f32.vlgmr.msra.gmra.mrb[0].mxu1 %vm433_vm2, %v422_v34  ;;  %v742_v58 = vsel %vm735_vm3, %v739_v48, %v741_v51  ;;  %v853_v59 = vrot.slane %v2241_v16, 4  ;;  %v855_v60 = vrot.slane %v2260_v26, 4  ;;  %v745_v61 = vsel %vm735_vm3, %v741_v51, %v736_v42 }
  0x8a   : > { %1549 = vmatmul.mubr.msk.f32.vlgmr.msra.gmra.mrb[0].mxu0 %vm433_vm2, %v626_v37  ;;  %1637 = vmatpush3.bf16.msra.mxu1 %v1634_v23  ;;  %v852_v62 = vsel %vm849_vm4, %v850_v56, %v851_v57  ;;  %v1667_v48 = vpack.c.bf16 (!%p1440_p8), %v1113_v44, %v1112_v43  ;;  %vm1960_vm6 = vmmov (!%p1440_p8), 0   ;;  %v1962_v51 = vmov (!%p1440_p8), 1983009808  }
  0x8b   : > { %1653 = vmatpush3.bf16.msra.mxu0 %v1650_v29  ;;  %1523 = vmatprep.mubr.msk.f32.mxu1 %vm433_vm2, %v424_v38  ;;  %v856_v63 = vsel %vm849_vm4, %v853_v59, %v855_v60  ;;  %v859_v0 = vsel %vm849_vm4, %v855_v60, %v850_v56  ;;  %v854_v1 = vsel %vm849_vm4, %v851_v57, %v853_v59  ;;  %v1011_v52 = vunpack.c.l.s4 (!%p1440_p8), %v1962_v51  ;;  %v1117_v56 = vld [vmem:[%s2447_s6 + $0x28] sm:$0xff] (!%p1440_p8) }
  0x8c   : > { %1551 = vmatprep.mubr.msk.f32.mxu0 %vm433_vm2, %v628_v40  ;;  %1639 = vmatprep.subr.bf16.mxu1 %v1638_v39  ;;  %vm1227_vm7 = vcmask (!%p1440_p8), 162816   ;;  %vm1304_vm8 = vcmask (!%p1440_p8), 11264  }
  0x8d   : > { %1524 = vmatmul.mubr.msk.f32.gmra.mrb[2].mxu1 %vm433_vm2, %v427_v46  ;;  %1655 = vmatprep.subr.bf16.mxu0 %v1654_v41  ;;  %v1013_v46 = vlaneseq (!%p1440_p8)  ;;  %v1012_v57 = vunpack.c.0.s8 (!%p1440_p8), %v1011_v52 }
  0x8e   : > { %1552 = vmatmul.mubr.msk.f32.gmra.mrb[2].mxu0 %vm433_vm2, %v631_v47  ;;  %1641 = vmatpush3.bf16.msra.mxu1 %v1638_v39  ;;  %v1959_v47 = vmov (!%p1440_p8), 0.0|0.0  }
  0x8f   : > { %1657 = vmatpush3.bf16.msra.mxu0 %v1654_v41  ;;  %1534 = vmatprep.mubr.msk.f32.mxu1 %vm433_vm2, %v2233_v11  ;;  %v1014_v53 = vshrl.u32 (!%p1440_p8), %v1013_v46, 7 }
  0x90   : > { %1562 = vmatprep.mubr.msk.f32.mxu0 %vm433_vm2, %v738_v50  ;;  %1659 = vmatprep.subr.bf16.mxu0 %v1658_v49  ;;  %v1961_v50 = vmov (!%p1440_p8), 0.0  }
  0x91   : > { %1535 = vmatmul.mubr.msk.f32.vlgmr.msra.gmra.mrb[0].mxu1 %vm433_vm2, %v2236_v13  ;;  %1693 = vmatprep.subr.bf16.mxu1 %v1658_v49 }
  0x92   : > { %1563 = vmatmul.mubr.msk.f32.vlgmr.msra.gmra.mrb[0].mxu0 %vm433_vm2, %v740_v54  ;;  %1695 = vmatpush3.bf16.msra.mxu1 %v1658_v49 }
  0x93   : > { %1661 = vmatpush3.bf16.msra.mxu0 %v1658_v49  ;;  %1537 = vmatprep.mubr.msk.f32.mxu1 %vm433_vm2, %v2241_v16  ;;  %v1115_v49 = vld [vmem:[%s2447_s6 + $0x18] sm:$0xff] (!%p1440_p8) }
  0x94   : > { %1565 = vmatprep.mubr.msk.f32.mxu0 %vm433_vm2, %v742_v58  ;;  %1663 = vmatprep.subr.bf16.mxu0 %v1662_v55  ;;  %v1670_v54 = vpack.c.bf16 (!%p1440_p8), %v1115_v49, %v1114_v45 }
  0x95   : > { %1538 = vmatmul.mubr.msk.f32.gmra.mrb[2].mxu1 %vm433_vm2, %v2260_v26  ;;  %1694 = vmatprep.subr.bf16.mxu1 %v1662_v55 }
  0x96   : > { %1566 = vmatmul.mubr.msk.f32.gmra.mrb[2].mxu0 %vm433_vm2, %v745_v61  ;;  %1696 = vmatpush3.bf16.msra.mxu1 %v1662_v55  ;;  %v2364_v61 = vsub.s32 (!%p1440_p8), %v1012_v57, %v1014_v53 }
  0x97   : > { %1665 = vmatpush3.bf16.msra.mxu0 %v1662_v55  ;;  %1576 = vmatprep.mubr.msk.f32.mxu0 %vm433_vm2, %v852_v62  ;;  %v1116_v55 = vld [vmem:[%s2447_s6 + $0x20] sm:$0xff] (!%p1440_p8) }
  0x98   : > { %1579 = vmatprep.mubr.msk.f32.mxu1 %vm433_vm2, %v856_v63  ;;  %1666 = vmatprep.subr.bf16.mxu0 (!%p1440_p8), %v1959_v47  ;;  %v1673_v62 = vpack.c.bf16 (!%p1440_p8), %v1117_v56, %v1116_v55  ;;  %v1118_v63 = vld [vmem:[%s2447_s6 + $0x30] sm:$0xff] (!%p1440_p8) }
  0x99   : > { %1580 = vmatmul.mubr.msk.f32.vlgmr.msra.gmra.mrb[4].mxu1 %vm433_vm2, %v859_v0  ;;  %1690 = vmatprep.subr.bf16.mxu1 (!%p1440_p8), %v1959_v47  ;;  %v1119_v0 = vld [vmem:[%s2447_s6 + $0x38] sm:$0xff] (!%p1440_p8) }
  0x9a   : > { %1577 = vmatmul.mubr.msk.f32.vlgmr.msra.gmra.mrb[0].mxu0 %vm433_vm2, %v854_v1  ;;  %1623 = vmatprep.mubr.msk.f32.mxu1 (!%p1440_p8), %vm1960_vm6, %v1961_v50 }
  0x9b   : > { %1614 = vmatprep.mubr.msk.f32.mxu0 (!%p1440_p8), %vm1960_vm6, %v1961_v50  ;;  %1668 = vmatpush3.bf16.msra.mxu0 (!%p1440_p8), %v1667_v48 }
  0x9c   : > { %1669 = vmatprep.subr.bf16.mxu0 (!%p1440_p8), %v1959_v47 }
  0x9f   : > { %1671 = vmatpush3.bf16.msra.mxu0 (!%p1440_p8), %v1670_v54 }
  0xa0   : > { %1672 = vmatprep.subr.bf16.mxu0 (!%p1440_p8), %v1959_v47 }
  0xa3   : > { %1674 = vmatpush3.bf16.msra.mxu0 (!%p1440_p8), %v1673_v62  ;;  %v1219_v62 = vld [vmem:[%s2449_s8 + $0x10] sm:$0xf] (!%p1440_p8) }
  0xa4   : > { %1675 = vmatprep.subr.bf16.mxu0 (!%p1440_p8), %v1959_v47 }
 0x164   : > { %v1536_v2 = vpop.f32.mrb[0].mxu1 }
 0x165   : > { %v602_v3 = vpop.f32.mrb[1].mxu1 }
 0x168   : > { %v1539_v4 = vpop.f32.mrb[2].mxu1 }
 0x169   : > { %v1567_v5 = vpop.f32.mrb[2].mxu0  ;;  %v612_v6 = vpop.f32.mrb[3].mxu1 }
 0x16a   : > { %v1699_v7 = vadd.f32 %v1567_v5, %v1539_v4  ;;  %v836_v8 = vpop.f32.mrb[3].mxu0  ;;  %v1120_v5 = vld [vmem:[%s2447_s6 + $0x40] sm:$0xff] (!%p1440_p8) }
 0x16b   : > { %v1701_v9 = vadd.f32 %v836_v8, %v612_v6  ;;  %v1121_v6 = vld [vmem:[%s2447_s6 + $0x48] sm:$0xff] (!%p1440_p8) }
 0x16c   : > { %v1581_v11 = vpop.f32.mrb[4].mxu1  ;;  %v1679_v8 = vpack.c.bf16 (!%p1440_p8), %v1121_v6, %v1120_v5 }
 0x16d   : > { %v1578_v12 = vpop.f32.mrb[0].mxu0  ;;  %v1700_v13 = vadd.f32 %v1699_v7, %v1581_v11  ;;  %v950_v15 = vpop.f32.mrb[5].mxu1  ;;  %v1123_v11 = vld [vmem:[%s2447_s6 + $0x58] sm:$0xff] (!%p1440_p8) }
 0x16e   : > { %v1697_v16 = vadd.f32 %v1578_v12, %v1536_v2  ;;  %v940_v17 = vpop.f32.mrb[1].mxu0  ;;  %v1702_v18 = vadd.f32 %v1701_v9, %v950_v15  ;;  %v1124_v15 = vld [vmem:[%s2447_s6 + $0x60] sm:$0xff] (!%p1440_p8) }
 0x16f   : > { %v968_v19 = vadd.f32 %v1700_v13, %v964_v10  ;;  %v1698_v20 = vadd.f32 %v940_v17, %v602_v3  ;;  %v1676_v3 = vpack.c.bf16 (!%p1440_p8), %v1119_v0, %v1118_v63 }
 0x170   : > { %v966_v21 = vadd.f32 %v1697_v16, %v964_v10  ;;  %v967_v22 = vadd.f32 %v1702_v18, %v963_v14  ;;  %v1122_v10 = vld [vmem:[%s2447_s6 + $0x50] sm:$0xff] (!%p1440_p8)  ;;  %v1125_v16 = vld [vmem:[%s2447_s6 + $0x68] sm:$0xff] (!%p1440_p8) }
 0x171   : > { %v965_v23 = vadd.f32 %v1698_v20, %v963_v14  ;;  %1677 = vmatpush3.bf16.msra.mxu0 (!%p1440_p8), %v1676_v3  ;;  %v1682_v13 = vpack.c.bf16 (!%p1440_p8), %v1123_v11, %v1122_v10  ;;  %v1685_v18 = vpack.c.bf16 (!%p1440_p8), %v1125_v16, %v1124_v15  ;;  %v1126_v20 = vld [vmem:[%s2447_s6 + $0x70] sm:$0xff] (!%p1440_p8) }
 0x172   : > { %v976_v24 = vmax.f32 %v967_v22, %v968_v19  ;;  %1678 = vmatprep.subr.bf16.mxu0 (!%p1440_p8), %v1959_v47 }
 0x173   : > { %v969_v25 = vmax.f32 %v965_v23, %v966_v21  ;;  %v1127_v21 = vld [vmem:[%s2447_s6 + $0x78] sm:$0xff] (!%p1440_p8) }
 0x174   : > { %v977_v26 = vrot.slane %v976_v24, 4  ;;  %v1688_v23 = vpack.c.bf16 (!%p1440_p8), %v1127_v21, %v1126_v20 }
 0x175   : > { %v970_v27 = vrot.slane %v969_v25, 4  ;;  %1680 = vmatpush3.bf16.msra.mxu0 (!%p1440_p8), %v1679_v8 }
 0x176   : > { %v978_v28 = vmax.f32 %v976_v24, %v977_v26  ;;  %1681 = vmatprep.subr.bf16.mxu0 (!%p1440_p8), %v1959_v47 }
 0x177   : > { %v971_v29 = vmax.f32 %v969_v25, %v970_v27 }
 0x178   : > { %v979_v30 = vrot.slane %v978_v28, 2 }
 0x179   : > { %v972_v31 = vrot.slane %v971_v29, 2  ;;  %1683 = vmatpush3.bf16.msra.mxu0 (!%p1440_p8), %v1682_v13 }
 0x17a   : > { %v980_v32 = vmax.f32 %v978_v28, %v979_v30  ;;  %1684 = vmatprep.subr.bf16.mxu0 (!%p1440_p8), %v1959_v47 }
 0x17b   : > { %v973_v33 = vmax.f32 %v971_v29, %v972_v31 }
 0x17c   : > { %v981_v34 = vrot.slane %v980_v32, 1 }
 0x17d   : > { %v974_v35 = vrot.slane %v973_v33, 1  ;;  %1686 = vmatpush3.bf16.msra.mxu0 (!%p1440_p8), %v1685_v18 }
 0x17e   : > { %v982_v37 = vmax.f32 %v980_v32, %v981_v34  ;;  %1687 = vmatprep.subr.bf16.mxu0 (!%p1440_p8), %v1959_v47 }
 0x17f   : > { %v975_v38 = vmax.f32 %v973_v33, %v974_v35  ;;  %1004 = sbr.rel (%p1440_p8) target bundleno = 1215 (0x4bf), region = 80 }
 0x180   : > { %v991_v39 = vadd.f32 %v1438_v36, %v982_v37 }
 0x181   : > { %v990_v40 = vadd.f32 %v1438_v36, %v975_v38  ;;  %1689 = vmatpush3.bf16.msra.mxu0 (!%p1440_p8), %v1688_v23 }
 0x182   : > { %v994_v41 = vrot.slane %v991_v39, 7 }
 0x184   : > { %v996_v42 = vsel %vm995_vm5, %v994_v41, %v990_v40  ;;  %v1441_v40 = vld [vmem:[#allocation7] ss:$0 sm:$0xff] (!%p1440_p8)  ;;  %v1442_v41 = vld [vmem:[#allocation8] ss:$0 sm:$0xff] (!%p1440_p8) }
 0x185   : > { %1000 = vst [vmem:[%s999_s23] sm:$0x3] %v996_v42  ;;  %v1088_v42 = vrot.slane (!%p1440_p8), %v1441_v40, %v2364_v61  ;;  %v1106_v45 = vrot.slane (!%p1440_p8), %v1442_v41, %v2364_v61 }
 0x187   : > { %v1089_v48 = vcombine.high %v1088_v42, %v1088_v42  ;;  %v1107_v52 = vcombine.high %v1106_v45, %v1106_v45 }
 0x18c   : > { %v1005_v58 = vld [vmem:[#allocation2] sm:$0x3]  ;;  %v1006_v59 = vld [vmem:[#allocation2 + $0x2] sm:$0x3] }
 0x18d   : > { %v1009_v60 = vcombine.low %v1005_v58, %v1006_v59 }
 0x18f   : > { %v1016_v1 = vrot.slane %v1009_v60, %v2364_v61 }
 0x191   : > { %v1018_v2 = vsel %vm849_vm4, %v1016_v1, 0.0 }
 0x192   : > { %v1019_v4 = vrot.slane %v1018_v2, 4 }
 0x194   : > { %v1020_v7 = vadd.f32 %v1019_v4, %v1018_v2 }
 0x196   : > { %v1021_v9 = vrot.slane %v1020_v7, 2 }
 0x198   : > { %v1022_v12 = vadd.f32 %v1021_v9, %v1020_v7 }
 0x19a   : > { %v1023_v14 = vrot.slane %v1022_v12, 1 }
 0x19c   : > { %v1024_v17 = vadd.f32 %v1023_v14, %v1022_v12 }
 0x19e   : > { %v1026_v19 = vmul.f32 0.25, %v1024_v17 }
 0x1a0   : > { %v1034_v22 = vrot.slane %v1026_v19, %v2364_v61 }
 0x1a2   : > { %v1035_v24 = vcombine.high %v1034_v22, %v1034_v22  ;;  %v1038_v25 = vsub.f32 %v1005_v58, %v1034_v22  ;;  %v1217_v58 = vld [vmem:[%s2449_s8] sm:$0xff] }
 0x1a4   : > { %v1039_v26 = vsub.f32 %v1006_v59, %v1035_v24  ;;  %v1040_v27 = vmul.f32 %v1038_v25, %v1038_v25  ;;  %v1218_v59 = vld [vmem:[%s2449_s8 + $0x8] sm:$0xff] }
 0x1a5   : > { %v1691_v60 = vpack.c.bf16 %v1218_v59, %v1217_v58 }
 0x1a6   : > { %v1041_v28 = vmul.f32 %v1039_v26, %v1039_v26 }
 0x1a7   : > { %1692 = vmatpush3.bf16.msra.mxu1 %v1691_v60 }
 0x1a8   : > { %v1044_v29 = vcombine.low %v1040_v27, %v1041_v28  ;;  %1621 = vmatprep.subr.mxu1 %v1961_v50  ;;  %v1444_v50 = vld [vmem:[%s2450_s9] ss:$0 sm:$0xff] }
 0x1aa   : > { %v1051_v30 = vrot.slane %v1044_v29, %v2364_v61 }
 0x1ab   : > { %1622 = vmatpush3.msk.msra.mxu1 %vm849_vm4, %v1219_v62 }
 0x1ac   : > { %v1053_v31 = vsel %vm849_vm4, %v1051_v30, 0.0 }
 0x1ad   : > { %v1054_v32 = vrot.slane %v1053_v31, 4 }
 0x1af   : > { %v1055_v33 = vadd.f32 %v1054_v32, %v1053_v31 }
 0x1b1   : > { %v1056_v34 = vrot.slane %v1055_v33, 2 }
 0x1b3   : > { %v1057_v35 = vadd.f32 %v1056_v34, %v1055_v33 }
 0x1b5   : > { %v1058_v36 = vrot.slane %v1057_v35, 1 }
 0x1b7   : > { %v1059_v37 = vadd.f32 %v1058_v36, %v1057_v35 }
 0x1b9   : > { %v1060_v38 = vmul.f32 0.25, %v1059_v37 }
 0x1bb   : > { %v1061_v39 = vadd.f32 1e-05, %v1060_v38 }
 0x1bd   : > { %1789 = vrsqrt.f32 %v1061_v39 }
 0x1c7   : > { %v1790_v43 = vpop.eup %1789 }
 0x1c8   : > { %v1070_v44 = vrot.slane %v1790_v43, %v2364_v61 }
 0x1ca   : > { %v1071_v46 = vcombine.high %v1070_v44, %v1070_v44  ;;  %v1074_v47 = vmul.f32 %v1070_v44, %v1038_v25 }
 0x1cc   : > { %v1075_v49 = vmul.f32 %v1071_v46, %v1039_v26  ;;  %v1092_v51 = vmul.f32 %v1088_v42, %v1074_v47 }
 0x1ce   : > { %v1093_v53 = vmul.f32 %v1089_v48, %v1075_v49  ;;  %v1110_v54 = vadd.f32 %v1106_v45, %v1092_v51 }
 0x1d0   : > { %v1111_v55 = vadd.f32 %v1107_v52, %v1093_v53 }
 0x1d2   : > { %v1137_v56 = vcombine.low %v1110_v54, %v1111_v55 }
 0x1d4   : > { %v1144_v57 = vrot.slane %v1137_v56, %v2364_v61  ;;  %v1443_v61 = vld [vmem:[%s2448_s7] ss:$0 sm:$0xff] }
 0x1d6   : > { %1615 = vmatmul.mubr.f32.vlgmr.msra.gmra.mrb[0].mxu0 %v1144_v57 }
 0x2a9   : > { %v1212_v63 = vpop.f32.mrb[0].mxu0 }
 0x2aa   : > { %v1213_v0 = vadd.f32 %v1443_v61, %v1212_v63  ;;  %v1616_v1 = vpop.f32.mrb[1].mxu0 }
 0x2ac   : > { %v1216_v2 = vmax.f32 %v1213_v0, 0.0 }
 0x2ae   : > { %1624 = vmatmul.mubr.msk.f32.vlgmr.msra.gmra.mrb[0].mxu1 %vm1227_vm7, %v1216_v2 }
 0x381   : > { %v1300_v3 = vpop.f32.mrb[0].mxu1 }
 0x382   : > { %v1301_v4 = vadd.f32 %v1444_v50, %v1300_v3  ;;  %v1625_v5 = vpop.f32.mrb[1].mxu1 }
 0x384   : > { %v1305_v6 = vsel %vm1304_vm8, %v1301_v4, -inf }
 0x385   : > { %1306 = vmax.xlane.f32.xlu0 %v1305_v6 }
 0x412   : > { %v1307_v7 = vpop.xlane.xlu0 %1306 }
 0x413   : > { %v1308_v8 = vsub.f32 %v1301_v4, %v1307_v7 }
 0x415   : > { %v1309_v9 = vmul.f32 1.442695, %v1308_v8 }
 0x417   : > { %1791 = vpow2.f32 %v1309_v9 }
 0x421   : > { %v1792_v10 = vpop.eup %1791 }
 0x422   : > { %v1311_v11 = vsel %vm1304_vm8, %v1792_v10, 0.0 }
 0x423   : > { %1312 = vadd.xlane.f32.xlu0 %v1311_v11 }
 0x4b0   : > { %v1313_v12 = vpop.xlane.xlu0 %1312 }
 0x4b1   : > { %1793 = vrcp.f32 %v1313_v12 }
 0x4bb   : > { %v1794_v13 = vpop.eup %1793 }
 0x4bc   : > { %v1315_v14 = vmul.f32 %v1794_v13, %v1792_v10 }
 0x4be   : > { %1316 = vst.msk [vmem:[%s2451_s10] sm:$0xf] %vm1304_vm8, %v1315_v14 }
 0x4bf PF: > { %p22_p10 = scmp.ge.s32.totalorder %s2138_s12, 4   ;;  %s2466_s13 = smov %s1943_s14 }
 0x4c0   : > { %s2467_s14 = smov %s1947_s15  ;;  %s2468_s15 = smov %s2148_s11 }
 0x4c1   : > { %s2469_s16 = smov %s2138_s12  ;;  %24 = sbr.rel (!%p22_p10) target bundleno = 5 (0x5), region = 117 }
 0x4c8   :  { %1328 = vsyncpa [#allocation4], 1 }
 0x4c9   :  { %1330 = vsyncpa [#allocation4 + $0x1], 1 }
 0x4ca   :  { %1331 = vsyncpa [#allocation6], 1 }
 0x4cb   :  { %1332 = vsyncpa [#allocation9], 1 }

</bundles_post_ra>
